<compile_context>
chip_gen: v7x
topology: tpu7x:2x2x1
jax: 0.10.0
libtpu: 0.0.40
codegen_flags: <defaults>
</compile_context>

<pallas_src>
import functools

import jax
import jax.numpy as jnp
from jax.experimental import pallas as pl
from jax.experimental.pallas import tpu as pltpu


def _conv_fused_kernel(x_ref, w_ref, b_ref, out_ref, *, K, W, OHW):
    # x_ref:   (Cin, H*W + K - 1)  -- one flattened (row-major) padded image
    # w_ref:   (K*K, Cout, Cin)    -- per-tap weights, resident across the grid
    # b_ref:   (Cout, 1)           -- bias, resident
    # out_ref: (Cout, OHW)         -- OHW = OH * W ("wide" rows; last K-1 cols
    #                                  of each output row are garbage, sliced
    #                                  off in the wrapper)
    xv = x_ref[...]                                   # single VMEM load
    acc = jnp.zeros(out_ref.shape, jnp.float32)
    for kh in range(K):
        for kw in range(K):
            s = kh * W + kw                           # static shift
            patch = xv[:, s:s + OHW]                  # (Cin, OHW) shifted view
            wk = w_ref[kh * K + kw]                   # (Cout, Cin)
            acc = acc + jnp.dot(wk, patch, preferred_element_type=jnp.float32)
    out_ref[...] = (acc + b_ref[...]).astype(out_ref.dtype)


def conv2d_pallas(x_nchw, weight, bias):
    """x_nchw: (B, Cin, H, W); weight: (Cout, Cin, K, K); bias: (Cout,)."""
    B, Cin, H, W = x_nchw.shape
    Cout, Cin_w, K, K2 = weight.shape
    assert Cin == Cin_w and K == K2
    OH, OW = H - K + 1, W - K + 1
    OHW = OH * W                       # wide row length (W, not OW)
    HWp = H * W + (K - 1)              # padded flat image length

    # Flatten (free reshape) + tiny (K-1)-element tail pad of the ORIGINAL x so
    # the largest static shift slice (s = (K-1)*(W+1)) stays in bounds.
    x_flat = jnp.pad(x_nchw.reshape(B, Cin, H * W), ((0, 0), (0, 0), (0, K - 1)))

    # Per-tap weight layout: w_taps[kh*K + kw] == weight[:, :, kh, kw].
    w_taps = jnp.transpose(weight, (2, 3, 0, 1)).reshape(K * K, Cout, Cin)
    w_taps = w_taps.astype(x_nchw.dtype)
    b2d = bias.reshape(Cout, 1).astype(jnp.float32)

    kernel = functools.partial(_conv_fused_kernel, K=K, W=W, OHW=OHW)

    bytes_acc = 4 * (B * Cin * HWp + K * K * Cout * Cin + Cout + B * Cout * OHW)
    out_wide = pl.pallas_call(
        kernel,
        out_shape=jax.ShapeDtypeStruct((B, Cout, OHW), x_nchw.dtype),
        grid_spec=pl.GridSpec(
            grid=(B,),
            in_specs=[
                # (Cin, HWp): both dims full-extent -> exempt from (8,128) rule.
                pl.BlockSpec((None, Cin, HWp), lambda b: (b, 0, 0)),
                # Weights / bias resident across the whole grid.
                pl.BlockSpec((K * K, Cout, Cin), lambda b: (0, 0, 0)),
                pl.BlockSpec((Cout, 1), lambda b: (0, 0)),
            ],
            # (Cout, OHW): full-extent dims, NCHW-ordered -> no output transpose.
            out_specs=pl.BlockSpec((None, Cout, OHW), lambda b: (b, 0, 0)),
        ),
        compiler_params=pltpu.CompilerParams(
            dimension_semantics=("parallel",),
        ),
        cost_estimate=pl.CostEstimate(
            flops=2 * B * Cout * Cin * K * K * OHW,
            transcendentals=0,
            bytes_accessed=bytes_acc,
        ),
    )(x_flat, w_taps, b2d)

    # Already NCHW; just drop the K-1 garbage columns of each wide row.
    out = out_wide.reshape(B, Cout, OH, W)[:, :, :, :OW]
    return out


def init_params(key, in_channels=3, out_channels=6, kernel_size=3):
    # Mirrors PyTorch Conv2d default init: U(-1/sqrt(fan_in), 1/sqrt(fan_in))
    fan_in = in_channels * kernel_size * kernel_size
    bound = 1.0 / jnp.sqrt(jnp.float32(fan_in))
    kw, kb = jax.random.split(key)
    weight = jax.random.uniform(
        kw, (out_channels, in_channels, kernel_size, kernel_size),
        minval=-bound, maxval=bound, dtype=jnp.float32)
    bias = jax.random.uniform(
        kb, (out_channels,), minval=-bound, maxval=bound, dtype=jnp.float32)
    return weight, bias


if __name__ == "__main__":
    key = jax.random.PRNGKey(0)
    kx, kp = jax.random.split(key)

    B, Cin, H, W = 2, 3, 16, 16
    x = jax.random.normal(kx, (B, Cin, H, W), dtype=jnp.float32)
    weight, bias = init_params(kp)

    out = conv2d_pallas(x, weight, bias)
    out = jax.block_until_ready(out)

    # Reference check against XLA's conv (NCHW, OIHW, valid padding).
    ref = jax.lax.conv_general_dilated(
        x, weight, window_strides=(1, 1), padding="VALID",
        dimension_numbers=("NCHW", "OIHW", "NCHW"),
    ) + bias.reshape(1, -1, 1, 1)
    ref = jax.block_until_ready(ref)

    assert out.shape == (B, 6, H - 2, W - 2), out.shape
    assert jnp.allclose(out, ref, atol=1e-4, rtol=1e-4), float(
        jnp.max(jnp.abs(out - ref)))
    print("KERNEL_OK")
</pallas_src>

<mosaic_0001>
module attributes {stable_mosaic.version = 11 : i64} {
  func.func @_conv_fused_kernel(%arg0: i32, %arg1: memref<1x3x258xf32, #tpu.memory_space<vmem>>, %arg2: memref<9x6x3xf32, #tpu.memory_space<vmem>>, %arg3: memref<6x1xf32, #tpu.memory_space<vmem>>, %arg4: memref<1x6x224xf32, #tpu.memory_space<vmem>>) attributes {dimension_semantics = [#tpu.dimension_semantics<parallel>], iteration_bounds = array<i64: 2>, scalar_prefetch = 0 : i64, scratch_operands = 0 : i64, tpu.core_type = #tpu.core_type<tc>, window_params = [{transform_indices = @transform_0, window_bounds = array<i64: 1, 3, 258>}, {pipeline_mode = #tpu.pipeline_mode<synchronous>, transform_indices = @transform_1, window_bounds = array<i64: 9, 6, 3>}, {pipeline_mode = #tpu.pipeline_mode<synchronous>, transform_indices = @transform_2, window_bounds = array<i64: 6, 1>}, {transform_indices = @transform_3, window_bounds = array<i64: 1, 6, 224>}]} {
    %c0 = arith.constant 0 : index
    %c0_0 = arith.constant 0 : index
    %c0_1 = arith.constant 0 : index
    %0 = vector.load %arg1[%c0, %c0_0, %c0_1] : memref<1x3x258xf32, #tpu.memory_space<vmem>>, vector<1x3x258xf32>
    %1 = vector.shape_cast %0 : vector<1x3x258xf32> to vector<3x258xf32>
    %cst = arith.constant 0.000000e+00 : f32
    %2 = vector.broadcast %cst : f32 to vector<6x224xf32>
    %3 = vector.extract_strided_slice %1 {offsets = [0, 0], sizes = [3, 224], strides = [1, 1]} : vector<3x258xf32> to vector<3x224xf32>
    %c0_2 = arith.constant 0 : index
    %c0_3 = arith.constant 0 : index
    %c0_4 = arith.constant 0 : index
    %4 = vector.load %arg2[%c0_2, %c0_3, %c0_4] : memref<9x6x3xf32, #tpu.memory_space<vmem>>, vector<1x6x3xf32>
    %5 = vector.shape_cast %4 : vector<1x6x3xf32> to vector<6x3xf32>
    %cst_5 = arith.constant dense<0.000000e+00> : vector<6x224xf32>
    %6 = tpu.matmul %5, %3, %cst_5 {dimension_numbers = #tpu.dot_dimension_numbers<[1], [0], [0], [1], [0, 0, 1, 1], [], []>} : vector<6x3xf32>, vector<3x224xf32>, vector<6x224xf32> -> vector<6x224xf32>
    %7 = arith.addf %2, %6 : vector<6x224xf32>
    %8 = vector.extract_strided_slice %1 {offsets = [0, 1], sizes = [3, 224], strides = [1, 1]} : vector<3x258xf32> to vector<3x224xf32>
    %c1 = arith.constant 1 : index
    %c0_6 = arith.constant 0 : index
    %c0_7 = arith.constant 0 : index
    %9 = vector.load %arg2[%c1, %c0_6, %c0_7] : memref<9x6x3xf32, #tpu.memory_space<vmem>>, vector<1x6x3xf32>
    %10 = vector.shape_cast %9 : vector<1x6x3xf32> to vector<6x3xf32>
    %cst_8 = arith.constant dense<0.000000e+00> : vector<6x224xf32>
    %11 = tpu.matmul %10, %8, %cst_8 {dimension_numbers = #tpu.dot_dimension_numbers<[1], [0], [0], [1], [0, 0, 1, 1], [], []>} : vector<6x3xf32>, vector<3x224xf32>, vector<6x224xf32> -> vector<6x224xf32>
    %12 = arith.addf %7, %11 : vector<6x224xf32>
    %13 = vector.extract_strided_slice %1 {offsets = [0, 2], sizes = [3, 224], strides = [1, 1]} : vector<3x258xf32> to vector<3x224xf32>
    %c2 = arith.constant 2 : index
    %c0_9 = arith.constant 0 : index
    %c0_10 = arith.constant 0 : index
    %14 = vector.load %arg2[%c2, %c0_9, %c0_10] : memref<9x6x3xf32, #tpu.memory_space<vmem>>, vector<1x6x3xf32>
    %15 = vector.shape_cast %14 : vector<1x6x3xf32> to vector<6x3xf32>
    %cst_11 = arith.constant dense<0.000000e+00> : vector<6x224xf32>
    %16 = tpu.matmul %15, %13, %cst_11 {dimension_numbers = #tpu.dot_dimension_numbers<[1], [0], [0], [1], [0, 0, 1, 1], [], []>} : vector<6x3xf32>, vector<3x224xf32>, vector<6x224xf32> -> vector<6x224xf32>
    %17 = arith.addf %12, %16 : vector<6x224xf32>
    %18 = vector.extract_strided_slice %1 {offsets = [0, 16], sizes = [3, 224], strides = [1, 1]} : vector<3x258xf32> to vector<3x224xf32>
    %c3 = arith.constant 3 : index
    %c0_12 = arith.constant 0 : index
    %c0_13 = arith.constant 0 : index
    %19 = vector.load %arg2[%c3, %c0_12, %c0_13] : memref<9x6x3xf32, #tpu.memory_space<vmem>>, vector<1x6x3xf32>
    %20 = vector.shape_cast %19 : vector<1x6x3xf32> to vector<6x3xf32>
    %cst_14 = arith.constant dense<0.000000e+00> : vector<6x224xf32>
    %21 = tpu.matmul %20, %18, %cst_14 {dimension_numbers = #tpu.dot_dimension_numbers<[1], [0], [0], [1], [0, 0, 1, 1], [], []>} : vector<6x3xf32>, vector<3x224xf32>, vector<6x224xf32> -> vector<6x224xf32>
    %22 = arith.addf %17, %21 : vector<6x224xf32>
    %23 = vector.extract_strided_slice %1 {offsets = [0, 17], sizes = [3, 224], strides = [1, 1]} : vector<3x258xf32> to vector<3x224xf32>
    %c4 = arith.constant 4 : index
    %c0_15 = arith.constant 0 : index
    %c0_16 = arith.constant 0 : index
    %24 = vector.load %arg2[%c4, %c0_15, %c0_16] : memref<9x6x3xf32, #tpu.memory_space<vmem>>, vector<1x6x3xf32>
    %25 = vector.shape_cast %24 : vector<1x6x3xf32> to vector<6x3xf32>
    %cst_17 = arith.constant dense<0.000000e+00> : vector<6x224xf32>
    %26 = tpu.matmul %25, %23, %cst_17 {dimension_numbers = #tpu.dot_dimension_numbers<[1], [0], [0], [1], [0, 0, 1, 1], [], []>} : vector<6x3xf32>, vector<3x224xf32>, vector<6x224xf32> -> vector<6x224xf32>
    %27 = arith.addf %22, %26 : vector<6x224xf32>
    %28 = vector.extract_strided_slice %1 {offsets = [0, 18], sizes = [3, 224], strides = [1, 1]} : vector<3x258xf32> to vector<3x224xf32>
    %c5 = arith.constant 5 : index
    %c0_18 = arith.constant 0 : index
    %c0_19 = arith.constant 0 : index
    %29 = vector.load %arg2[%c5, %c0_18, %c0_19] : memref<9x6x3xf32, #tpu.memory_space<vmem>>, vector<1x6x3xf32>
    %30 = vector.shape_cast %29 : vector<1x6x3xf32> to vector<6x3xf32>
    %cst_20 = arith.constant dense<0.000000e+00> : vector<6x224xf32>
    %31 = tpu.matmul %30, %28, %cst_20 {dimension_numbers = #tpu.dot_dimension_numbers<[1], [0], [0], [1], [0, 0, 1, 1], [], []>} : vector<6x3xf32>, vector<3x224xf32>, vector<6x224xf32> -> vector<6x224xf32>
    %32 = arith.addf %27, %31 : vector<6x224xf32>
    %33 = vector.extract_strided_slice %1 {offsets = [0, 32], sizes = [3, 224], strides = [1, 1]} : vector<3x258xf32> to vector<3x224xf32>
    %c6 = arith.constant 6 : index
    %c0_21 = arith.constant 0 : index
    %c0_22 = arith.constant 0 : index
    %34 = vector.load %arg2[%c6, %c0_21, %c0_22] : memref<9x6x3xf32, #tpu.memory_space<vmem>>, vector<1x6x3xf32>
    %35 = vector.shape_cast %34 : vector<1x6x3xf32> to vector<6x3xf32>
    %cst_23 = arith.constant dense<0.000000e+00> : vector<6x224xf32>
    %36 = tpu.matmul %35, %33, %cst_23 {dimension_numbers = #tpu.dot_dimension_numbers<[1], [0], [0], [1], [0, 0, 1, 1], [], []>} : vector<6x3xf32>, vector<3x224xf32>, vector<6x224xf32> -> vector<6x224xf32>
    %37 = arith.addf %32, %36 : vector<6x224xf32>
    %38 = vector.extract_strided_slice %1 {offsets = [0, 33], sizes = [3, 224], strides = [1, 1]} : vector<3x258xf32> to vector<3x224xf32>
    %c7 = arith.constant 7 : index
    %c0_24 = arith.constant 0 : index
    %c0_25 = arith.constant 0 : index
    %39 = vector.load %arg2[%c7, %c0_24, %c0_25] : memref<9x6x3xf32, #tpu.memory_space<vmem>>, vector<1x6x3xf32>
    %40 = vector.shape_cast %39 : vector<1x6x3xf32> to vector<6x3xf32>
    %cst_26 = arith.constant dense<0.000000e+00> : vector<6x224xf32>
    %41 = tpu.matmul %40, %38, %cst_26 {dimension_numbers = #tpu.dot_dimension_numbers<[1], [0], [0], [1], [0, 0, 1, 1], [], []>} : vector<6x3xf32>, vector<3x224xf32>, vector<6x224xf32> -> vector<6x224xf32>
    %42 = arith.addf %37, %41 : vector<6x224xf32>
    %43 = vector.extract_strided_slice %1 {offsets = [0, 34], sizes = [3, 224], strides = [1, 1]} : vector<3x258xf32> to vector<3x224xf32>
    %c8 = arith.constant 8 : index
    %c0_27 = arith.constant 0 : index
    %c0_28 = arith.constant 0 : index
    %44 = vector.load %arg2[%c8, %c0_27, %c0_28] : memref<9x6x3xf32, #tpu.memory_space<vmem>>, vector<1x6x3xf32>
    %45 = vector.shape_cast %44 : vector<1x6x3xf32> to vector<6x3xf32>
    %cst_29 = arith.constant dense<0.000000e+00> : vector<6x224xf32>
    %46 = tpu.matmul %45, %43, %cst_29 {dimension_numbers = #tpu.dot_dimension_numbers<[1], [0], [0], [1], [0, 0, 1, 1], [], []>} : vector<6x3xf32>, vector<3x224xf32>, vector<6x224xf32> -> vector<6x224xf32>
    %47 = arith.addf %42, %46 : vector<6x224xf32>
    %c0_30 = arith.constant 0 : index
    %c0_31 = arith.constant 0 : index
    %48 = vector.load %arg3[%c0_30, %c0_31] : memref<6x1xf32, #tpu.memory_space<vmem>>, vector<6x1xf32>
    %49 = vector.broadcast %48 : vector<6x1xf32> to vector<6x224xf32>
    %50 = arith.addf %47, %49 : vector<6x224xf32>
    %c0_32 = arith.constant 0 : index
    %c0_33 = arith.constant 0 : index
    %c0_34 = arith.constant 0 : index
    %51 = vector.load %arg4[%c0_32, %c0_33, %c0_34] : memref<1x6x224xf32, #tpu.memory_space<vmem>>, vector<1x6x224xf32>
    %52 = vector.shape_cast %51 : vector<1x6x224xf32> to vector<6x224xf32>
    %53 = vector.shape_cast %50 : vector<6x224xf32> to vector<1x6x224xf32>
    tpu.vector_store %arg4[%c0_32, %c0_33, %c0_34], %53 {strides = array<i32>} : memref<1x6x224xf32, #tpu.memory_space<vmem>>, vector<1x6x224xf32>,
    return
  }
  func.func @transform_0(%arg0: i32) -> (i32, i32, i32) {
    %c0_i32 = arith.constant 0 : i32
    %c0_i32_0 = arith.constant 0 : i32
    %c0_i32_1 = arith.constant 0 : i32
    return %arg0, %c0_i32, %c0_i32_0 : i32, i32, i32
  }
  func.func @transform_1(%arg0: i32) -> (i32, i32, i32) {
    %c0_i32 = arith.constant 0 : i32
    %c0_i32_0 = arith.constant 0 : i32
    %c0_i32_1 = arith.constant 0 : i32
    %c0_i32_2 = arith.constant 0 : i32
    return %c0_i32, %c0_i32_0, %c0_i32_1 : i32, i32, i32
  }
  func.func @transform_2(%arg0: i32) -> (i32, i32) {
    %c0_i32 = arith.constant 0 : i32
    %c0_i32_0 = arith.constant 0 : i32
    %c0_i32_1 = arith.constant 0 : i32
    return %c0_i32, %c0_i32_0 : i32, i32
  }
  func.func @transform_3(%arg0: i32) -> (i32, i32, i32) {
    %c0_i32 = arith.constant 0 : i32
    %c0_i32_0 = arith.constant 0 : i32
    %c0_i32_1 = arith.constant 0 : i32
    return %arg0, %c0_i32, %c0_i32_0 : i32, i32, i32
  }
}

</mosaic_0001>

<bundles_post_ra>
// kernel: tpu_custom_call.1
= control target key start
LH: loop header
LB: loop body
LE: loop exit
PB: predicated region body
PF: predicated region fallthrough
CT: control target
= control target key end

     0   :  { %s1152_s12 = smov 0   ;;  %s1241_s0 = inlined_call_operand.vmem [shape: f32[2,3,258], index: 0, kind: input, shape index: {}]   ;;  %s1242_s1 = inlined_call_operand.vmem [shape: f32[9,6,3], index: 1, kind: input, shape index: {}]   ;;  %s1243_s2 = inlined_call_operand.vmem [shape: f32[6,1], index: 2, kind: input, shape index: {}]   ;;  %s1244_s3 = inlined_call_operand.vmem [shape: f32[2,6,224], index: 3, kind: output, shape index: {}]  }
   0x1 LB: > { %s1031_s13 = sadd.s32 4294967295, %s1120_s12   ;;  %p1035_p0 = scmp.ge.s32.totalorder %s1120_s12, 1  ;;  %s1120_s12 = sphi %s1152_s12, %s13_s12  }
   0x2   : > { %p137_p1 = scmp.lt.s32.totalorder %s1120_s12, 3 }
   0x4   : > { %p138_p2 = pnand %p1035_p0, %p137_p1 }
   0x5   : > { %p161_p3 = scmp.lt.s32.totalorder (!%p138_p2), %s1031_s13, 1  ;;  %v1122_v0 = vmov (!%p138_p2), 0.0   ;;  %s1123_s18 = smov (!%p138_p2), 127   ;;  %v1130_v4 = vmov (!%p138_p2), 0   ;;  %v965_v5 = vld [vmem:[%s1243_s2] sm:$0x3f] (!%p138_p2) }
   0x6   : > { %141 = sbr.rel (%p138_p2) target bundleno = 389 (0x185), region = 32  ;;  %597 = vmatprep.mubr.f32.mxu0 (!%p138_p2), %v1122_v0  ;;  %257 = vmatprep.mubr.f32.mxu1 (!%p138_p2), %v1122_v0  ;;  %s1124_s19 = smov (!%p138_p2), 111   ;;  %vm188_vm0 = vcmask (!%p138_p2), 1042432   ;;  %vm182_vm1 = vcmask (!%p138_p2), 1039360   ;;  %vm524_vm2 = vcmask (!%p138_p2), 908288   ;;  %vm184_vm3 = vcmask (!%p138_p2), 23552  }
   0x7   : > { %s1125_s20 = smov (!%p138_p2), 110   ;;  %s1126_s21 = smov (!%p138_p2), 96   ;;  %1112 = vset.pattern.permute.xlu0 (!%p138_p2), %v1130_v4  ;;  %v1054_v10 = vld [vmem:[%s1242_s1 + $0x20] sm:$0x3f] (!%p138_p2)  ;;  %v1039_v11 = vld [vmem:[%s1242_s1 + $0x8] sm:$0x3f] (!%p138_p2) }
   0x8   : > { %s1127_s22 = smov (!%p138_p2), 95   ;;  %s1128_s23 = smov (!%p138_p2), 126   ;;  %vm612_vm4 = vcmask (!%p138_p2), 900096   ;;  %vm700_vm5 = vcmask (!%p138_p2), 785408   ;;  %v1058_v19 = vld [vmem:[%s1242_s1 + $0x28] sm:$0x3f] (!%p138_p2) }
   0x9   : > { %s1129_s24 = smov (!%p138_p2), 94   ;;  %s1131_s25 = smov (!%p138_p2), 112   ;;  %v173_v20 = vld [vmem:[%s1242_s1] sm:$0x3f] (!%p138_p2)  ;;  %vm791_vm6 = vcmask (!%p138_p2), 777216   ;;  %vm348_vm7 = vcmask (!%p138_p2), 1031168  }
   0xa   : > { %v1062_v27 = vld [vmem:[%s1242_s1 + $0x30] sm:$0x3f] (!%p138_p2)  ;;  %vm882_vm8 = vcmask (!%p138_p2), 769024   ;;  %v1066_v35 = vld [vmem:[%s1242_s1 + $0x38] sm:$0x3f] (!%p138_p2)  ;;  %vm436_vm9 = vcmask (!%p138_p2), 916480  }
   0xb   : > { %v1046_v28 = vld [vmem:[%s1242_s1 + $0x10] sm:$0x3f] (!%p138_p2)  ;;  %v1050_v39 = vld [vmem:[%s1242_s1 + $0x18] sm:$0x3f] (!%p138_p2)  ;;  %v1070_v42 = vld [vmem:[%s1242_s1 + $0x40] sm:$0x3f] (!%p138_p2) }
   0xc   : > { %vm974_vm10 = vcmask (!%p138_p2), 783360  }
   0xd   : > { %s1246_s13 = smov (!%p161_p3, %s1031_s13), 1 }
   0xe   : > { %s1093_s14 = smul.u32 12, %s1246_s13 }
  0x10   : > { %s165_s17 = scalar_lea.vmem %s1241_s0, %s1093_s14 }
  0x11   : > { %v171_v1 = vld [vmem:[%s165_s17] sm:$0x77]  ;;  %v172_v3 = vld [vmem:[%s165_s17 + $0x8] sm:$0x7] }
  0x12   : > { %178 = vrot.lane.b32.xlu1 %v171_v1, %s1123_s18  ;;  %520 = vrot.lane.b32.xlu0 %v171_v1, %s1124_s19  ;;  %v177_v2 = vcombine.high %v171_v1, %v171_v1 }
  0x16   : > { %180 = vrot.lane.b32.xlu1 %v177_v2, %s1123_s18  ;;  %522 = vrot.lane.b32.xlu0 %v177_v2, %s1124_s19 }
  0x1a   : > { %610 = vrot.lane.b32.xlu1 %v177_v2, %s1125_s20  ;;  %608 = vrot.lane.b32.xlu0 %v171_v1, %s1125_s20 }
  0x1e   : > { %698 = vrot.lane.b32.xlu1 %v177_v2, %s1126_s21  ;;  %696 = vrot.lane.b32.xlu0 %v171_v1, %s1126_s21  ;;  %s1076_s21 = sshll.u32 %s1246_s13, 4 }
  0x22   : > { %789 = vrot.lane.b32.xlu1 %v172_v3, %s1127_s22  ;;  %787 = vrot.lane.b32.xlu0 %v177_v2, %s1127_s22 }
  0x26   : > { %346 = vrot.lane.b32.xlu1 %v177_v2, %s1128_s23  ;;  %344 = vrot.lane.b32.xlu0 %v171_v1, %s1128_s23 }
  0x2a   : > { %878 = vrot.lane.b32.xlu1 %v177_v2, %s1129_s24  ;;  %785 = vrot.lane.b32.xlu0 %v171_v1, %s1127_s22 }
  0x2e   : > { %432 = vrot.lane.b32.xlu1 %v171_v1, %s1131_s25  ;;  %880 = vrot.lane.b32.xlu0 %v172_v3, %s1129_s24 }
  0x32   : > { %876 = vrot.lane.b32.xlu1 %v171_v1, %s1129_s24  ;;  %434 = vrot.lane.b32.xlu0 %v177_v2, %s1131_s25  ;;  %s170_s24 = scalar_lea.vmem %s1244_s3, %s1076_s21 }
  0x36   : > { %968 = vperm.xlu0 %1112, %v965_v5  }
  0x84   : > { %v179_v6 = vpop.permute.xlu1 %178  ;;  %v521_v7 = vpop.permute.xlu0 %520 }
  0x88   : > { %v181_v8 = vpop.permute.xlu1 %180  ;;  %v523_v9 = vpop.permute.xlu0 %522 }
  0x89   : > { %1040 = vmatprep.subr.msk.mxu1 %vm188_vm0, %v181_v8  ;;  %1055 = vmatprep.subr.msk.mxu0 %vm188_vm0, %v523_v9  ;;  %v183_v12 = vsel %vm182_vm1, %v179_v6, %v181_v8  ;;  %v525_v13 = vsel %vm524_vm2, %v521_v7, %v523_v9 }
  0x8a   : > { %1041 = vmatpush1.msk.msra.mxu1 %vm188_vm0, %v183_v12  ;;  %1056 = vmatpush1.msk.msra.mxu0 %vm188_vm0, %v525_v13 }
  0x8b   : > { %1057 = vmatmul.mubr.msk.f32.vlgmr.msra.gmra.mrb[0].mxu0 %vm184_vm3, %v1054_v10  ;;  %1042 = vmatmul.mubr.msk.f32.vlgmr.msra.gmra.mrb[0].mxu1 %vm184_vm3, %v1039_v11 }
  0x8c   : > { %v611_v14 = vpop.permute.xlu1 %610  ;;  %v609_v15 = vpop.permute.xlu0 %608  ;;  %685 = vmatprep.mubr.f32.mxu0 %v1122_v0  ;;  %1043 = vmatprep.subr.msk.mxu1 %vm188_vm0, %v177_v2 }
  0x8d   : > { %v613_v16 = vsel %vm612_vm4, %v609_v15, %v611_v14  ;;  %1059 = vmatprep.subr.msk.mxu0 %vm188_vm0, %v611_v14  ;;  %1044 = vmatpush1.msk.msra.mxu1 %vm188_vm0, %v171_v1 }
  0x8e   : > { %1060 = vmatpush1.msk.msra.mxu0 %vm188_vm0, %v613_v16  ;;  %335 = vmatprep.mubr.f32.mxu1 %v1122_v0 }
  0x90   : > { %v699_v17 = vpop.permute.xlu1 %698  ;;  %v697_v18 = vpop.permute.xlu0 %696 }
  0x91   : > { %v701_v21 = vsel %vm700_vm5, %v697_v18, %v699_v17  ;;  %1063 = vmatprep.subr.msk.mxu0 %vm188_vm0, %v699_v17 }
  0x93   : > { %1061 = vmatmul.mubr.msk.f32.vlgmr.msra.gmra.mrb[0].mxu0 %vm184_vm3, %v1058_v19  ;;  %1045 = vmatmul.mubr.msk.f32.vlgmr.msra.gmra.mrb[0].mxu1 %vm184_vm3, %v173_v20 }
  0x94   : > { %1064 = vmatpush1.msk.msra.mxu0 %vm188_vm0, %v701_v21  ;;  %v790_v22 = vpop.permute.xlu1 %789  ;;  %v788_v23 = vpop.permute.xlu0 %787  ;;  %773 = vmatprep.mubr.f32.mxu0 %v1122_v0 }
  0x95   : > { %v793_v24 = vsel %vm791_vm6, %v788_v23, %v790_v22  ;;  %421 = vmatprep.mubr.f32.mxu1 %v1122_v0 }
  0x96   : > { %1067 = vmatprep.subr.msk.mxu0 %vm188_vm0, %v793_v24 }
  0x98   : > { %v347_v25 = vpop.permute.xlu1 %346  ;;  %v345_v26 = vpop.permute.xlu0 %344 }
  0x99   : > { %v349_v29 = vsel %vm348_vm7, %v345_v26, %v347_v25  ;;  %1047 = vmatprep.subr.msk.mxu1 %vm188_vm0, %v347_v25 }
  0x9a   : > { %1048 = vmatpush1.msk.msra.mxu1 %vm188_vm0, %v349_v29 }
  0x9b   : > { %1065 = vmatmul.mubr.msk.f32.vlgmr.msra.gmra.mrb[0].mxu0 %vm184_vm3, %v1062_v27  ;;  %1049 = vmatmul.mubr.msk.f32.vlgmr.msra.gmra.mrb[0].mxu1 %vm184_vm3, %v1046_v28 }
  0x9c   : > { %v879_v30 = vpop.permute.xlu1 %878  ;;  %v786_v31 = vpop.permute.xlu0 %785  ;;  %865 = vmatprep.mubr.f32.mxu0 %v1122_v0  ;;  %509 = vmatprep.mubr.f32.mxu1 %v1122_v0 }
  0x9d   : > { %v792_v32 = vsel %vm791_vm6, %v786_v31, %v788_v23 }
  0x9e   : > { %1068 = vmatpush1.msk.msra.mxu0 %vm188_vm0, %v792_v32 }
  0xa0   : > { %v433_v33 = vpop.permute.xlu1 %432  ;;  %v881_v34 = vpop.permute.xlu0 %880 }
  0xa1   : > { %v884_v36 = vsel %vm882_vm8, %v879_v30, %v881_v34 }
  0xa2   : > { %1071 = vmatprep.subr.msk.mxu0 %vm188_vm0, %v884_v36 }
  0xa3   : > { %1069 = vmatmul.mubr.msk.f32.vlgmr.msra.gmra.mrb[0].mxu0 %vm184_vm3, %v1066_v35 }
  0xa4   : > { %v877_v37 = vpop.permute.xlu1 %876  ;;  %v435_v38 = vpop.permute.xlu0 %434  ;;  %956 = vmatprep.mubr.f32.mxu0 %v1122_v0 }
  0xa5   : > { %v883_v40 = vsel %vm882_vm8, %v877_v37, %v879_v30  ;;  %v437_v41 = vsel %vm436_vm9, %v433_v33, %v435_v38  ;;  %1051 = vmatprep.subr.msk.mxu1 %vm188_vm0, %v435_v38 }
  0xa6   : > { %1052 = vmatpush1.msk.msra.mxu1 %vm188_vm0, %v437_v41  ;;  %1072 = vmatpush1.msk.msra.mxu0 %vm188_vm0, %v883_v40 }
  0xa7   : > { %1053 = vmatmul.mubr.msk.f32.vlgmr.msra.gmra.mrb[0].mxu1 %vm184_vm3, %v1050_v39 }
  0xab   : > { %1073 = vmatmul.mubr.msk.f32.vlgmr.msra.gmra.mrb[0].mxu0 %vm184_vm3, %v1070_v42 }
  0xb5   : > { %v969_v46 = vpop.permute.xlu0 %968 }
 0x17a   : > { %v511_v43 = vpop.f32.mrb[0].mxu1 }
 0x17b   : > { %v513_v44 = vpop.f32.mrb[1].mxu1 }
 0x17e   : > { %v958_v45 = vpop.f32.mrb[0].mxu0 }
 0x17f   : > { %v1077_v47 = vadd.f32 %v958_v45, %v511_v43  ;;  %v960_v48 = vpop.f32.mrb[1].mxu0 }
 0x180   : > { %v1078_v49 = vadd.f32 %v960_v48, %v513_v44 }
 0x181   : > { %v971_v50 = vadd.f32 %v1077_v47, %v969_v46 }
 0x182   : > { %v972_v51 = vadd.f32 %v1078_v49, %v969_v46 }
 0x183   : > { %973 = vst [vmem:[%s170_s24] sm:$0x3f] %v971_v50 }
 0x184   : > { %975 = vst.msk [vmem:[%s170_s24 + $0x8] sm:$0x3f] %vm974_vm10, %v972_v51 }
 0x185 PF: > { %s13_s12 = sadd.s32 1, %s1120_s12  }
 0x186   : > { %p10_p4 = scmp.ge.s32.totalorder %s13_s12, 4  }
 0x188   :  { %12 = sbr.rel (!%p10_p4) target bundleno = 1 (0x1), region = 70 }

</bundles_post_ra>
